<compile_context>
chip_gen: v7x
topology: tpu7x:2x2x1
jax: 0.10.0
libtpu: 0.0.40
codegen_flags: <defaults>
</compile_context>

<pallas_src>
import numpy as np

import jax
import jax.numpy as jnp
from jax.experimental import pallas as pl
from jax.experimental.pallas import tpu as pltpu  # noqa: F401  (TPU backend assumed)

# ----------------------------------------------------------------------------
# Concrete model dimensions
# ----------------------------------------------------------------------------
N, CIN, H, W = 2, 4, 16, 16          # batch, in_channels, spatial
COUT, KH, KW = 8, 3, 3               # conv num_kernels, kernel size (pad=1, stride=1)
OH, OW = 4, 4                        # adaptive-pool output
PKH, PKW = H // OH, W // OW          # pooling window (4x4)
HIDDEN, OUT = 32, 10                 # FcNN hidden / output

HP, WP = H + 2, W + 2                # conv-padded spatial (18, 18)
NPAD = 8                             # batch rows padded to one sublane tile
FPAD = 128                           # hidden / logits lanes
CL = W * COUT                        # conv lanes  (w, cout)  = 128
KB = WP * CIN                        # banded contraction     = 72  (w', cin)
PLANES = COUT * OW                   # pooled lanes (c, ow)   = 32


# ----------------------------------------------------------------------------
# Fused Pallas kernel:
#   banded conv (3 dots) + bias + ReLU -> w-pool dot -> h-pool/batch-select dot
#   -> fc1 (4 dots) + ReLU -> fc2
# ----------------------------------------------------------------------------
def _fused_kernel(xp_ref, wband_ref, bc_ref, sel_ref, rw_ref, w1s_ref,
                  b1_ref, w2_ref, b2_ref, o_ref):
    x2 = xp_ref[...]                                        # [N*HP, KB] f32

    # Conv: for each kernel row dh, dot the h-shifted image rows against the
    # banded weight.  Per-batch accumulators keep every slice/concat aligned.
    conv0 = jnp.zeros((H, CL), jnp.float32)                 # batch 0, rows = h
    conv1 = jnp.zeros((H, CL), jnp.float32)                 # batch 1, rows = h
    for dh in range(KH):
        w_dh = wband_ref[dh]                                # [KB, CL] bf16
        lhs0 = x2[dh:dh + H, :].astype(jnp.bfloat16)        # [H, KB]
        lhs1 = x2[HP + dh:HP + dh + H, :].astype(jnp.bfloat16)
        conv0 = conv0 + jnp.dot(lhs0, w_dh, preferred_element_type=jnp.float32)
        conv1 = conv1 + jnp.dot(lhs1, w_dh, preferred_element_type=jnp.float32)
    conv = jnp.concatenate([conv0, conv1], axis=0)          # [N*H, CL] rows=(n,h)
    conv = jnp.maximum(conv + bc_ref[...], 0.0)             # bias + ReLU (f32)

    # Adaptive avg-pool as two tiny matmuls:
    #   lanes (w, c) -> (c, ow)   via rw  (includes the 1/16 factor)
    #   rows  (n, h) -> (oh*8+n)  via sel (0/1 selector; padded rows stay 0)
    pw = jnp.dot(conv.astype(jnp.bfloat16), rw_ref[...],
                 preferred_element_type=jnp.float32)        # [N*H, PLANES]
    p3 = jnp.dot(sel_ref[...], pw.astype(jnp.bfloat16),
                 preferred_element_type=jnp.float32)        # [OH*NPAD, PLANES]

    # fc1: contract over (oh, c, ow) with 4 sublane-aligned [8,32]x[32,128] dots.
    acc = jnp.zeros((NPAD, FPAD), jnp.float32)
    for oh in range(OH):
        lhs = p3[oh * NPAD:(oh + 1) * NPAD, :].astype(jnp.bfloat16)
        acc = acc + jnp.dot(lhs, w1s_ref[oh], preferred_element_type=jnp.float32)
    h1 = jnp.maximum(acc + b1_ref[...], 0.0)                # [NPAD, FPAD]

    # fc2
    out = jnp.dot(h1.astype(jnp.bfloat16), w2_ref[...],
                  preferred_element_type=jnp.float32)
    o_ref[...] = out + b2_ref[...]                          # [NPAD, FPAD]


# ----------------------------------------------------------------------------
# One-time parameter repacking / padding (outside the jitted forward)
# ----------------------------------------------------------------------------
def prepare_params(params):
    conv_w = np.asarray(params["conv_w"], np.float32)       # [COUT, CIN, KH, KW]
    fc1_w = np.asarray(params["fc1_w"], np.float32)         # [COUT*OH*OW, HIDDEN]

    # Banded conv weight per kernel row dh:
    #   wband[dh, w'*CIN + cin, w*COUT + cout] = conv_w[cout, cin, dh, w'-w]
    wband = np.zeros((KH, KB, CL), np.float32)
    for dh in range(KH):
        for w in range(W):
            for kw in range(KW):
                wp = w + kw                                  # padded w' coord
                for cin in range(CIN):
                    for cout in range(COUT):
                        wband[dh, wp * CIN + cin, w * COUT + cout] = \
                            conv_w[cout, cin, dh, kw]

    # Conv bias tiled onto the (w, cout) lanes.
    bc = np.zeros((1, CL), np.float32)
    bc[0, :] = np.tile(np.asarray(params["conv_b"], np.float32), W)

    # w-window pooling matrix (exact 1/16 entries, exact in bf16):
    #   rw[w*COUT + c, c*OW + (w//PKW)] = 1/16
    rw = np.zeros((CL, PLANES), np.float32)
    for w in range(W):
        for c in range(COUT):
            rw[w * COUT + c, c * OW + (w // PKW)] = 1.0 / (PKH * PKW)

    # h-window + batch selector (0/1):
    #   sel[oh*NPAD + n, n*H + h] = 1 if h // PKH == oh   (rows n>=N stay zero)
    sel = np.zeros((OH * NPAD, N * H), np.float32)
    for oh in range(OH):
        for n in range(N):
            for h in range(H):
                if h // PKH == oh:
                    sel[oh * NPAD + n, n * H + h] = 1.0

    # fc1 per-oh weight slices; PyTorch flatten order of [N, C, OH, OW] is
    # (c, oh, ow), and the kernel's pooled lanes are (c, ow).
    w1s = np.zeros((OH, PLANES, FPAD), np.float32)
    for oh in range(OH):
        for c in range(COUT):
            for ow in range(OW):
                w1s[oh, c * OW + ow, :HIDDEN] = fc1_w[c * OH * OW + oh * OW + ow, :]
    b1 = np.zeros((1, FPAD), np.float32)
    b1[0, :HIDDEN] = np.asarray(params["fc1_b"], np.float32)

    w2 = np.zeros((FPAD, FPAD), np.float32)
    w2[:HIDDEN, :OUT] = np.asarray(params["fc2_w"], np.float32)
    b2 = np.zeros((1, FPAD), np.float32)
    b2[0, :OUT] = np.asarray(params["fc2_b"], np.float32)

    return dict(
        wband=jnp.asarray(wband, jnp.bfloat16),
        bc=jnp.asarray(bc, jnp.float32),
        sel=jnp.asarray(sel, jnp.bfloat16),
        rw=jnp.asarray(rw, jnp.bfloat16),
        w1s=jnp.asarray(w1s, jnp.bfloat16),
        b1=jnp.asarray(b1, jnp.float32),
        w2=jnp.asarray(w2, jnp.bfloat16),
        b2=jnp.asarray(b2, jnp.float32),
    )


# ----------------------------------------------------------------------------
# BuiltModel.forward : one fused pallas_call (glue = transpose + pad + reshape)
# ----------------------------------------------------------------------------
@jax.jit
def built_model_forward(x, prepped):
    # Minimal XLA glue: NCHW -> NHWC once, the conv's own spatial padding, and
    # a free reshape to [(n, h'), (w', cin)] so the kernel's h-shifted row
    # slices are plain (sub)lane-local loads.  ~10 KiB total.
    xh = x.astype(jnp.float32).transpose(0, 2, 3, 1)            # [N, H, W, CIN]
    xp = jnp.pad(xh, ((0, 0), (1, 1), (1, 1), (0, 0)))          # [N, HP, WP, CIN]
    xp2 = xp.reshape(N * HP, KB)                                # [36, 72]

    flops = 2 * (KH * (N * H) * KB * CL          # banded conv
                 + (N * H) * CL * PLANES         # w-pool
                 + (OH * NPAD) * (N * H) * PLANES  # h-pool / batch select
                 + OH * NPAD * PLANES * FPAD     # fc1
                 + NPAD * FPAD * FPAD)           # fc2
    bytes_accessed = (4 * (N * HP * KB) + 2 * (KH * KB * CL) + 4 * CL
                      + 2 * (OH * NPAD * N * H) + 2 * (CL * PLANES)
                      + 2 * (OH * PLANES * FPAD) + 4 * FPAD
                      + 2 * (FPAD * FPAD) + 4 * FPAD + 4 * (NPAD * FPAD))

    out = pl.pallas_call(
        _fused_kernel,
        out_shape=jax.ShapeDtypeStruct((NPAD, FPAD), jnp.float32),
        in_specs=[
            pl.BlockSpec((N * HP, KB), lambda: (0, 0)),          # padded image
            pl.BlockSpec((KH, KB, CL), lambda: (0, 0, 0)),       # banded conv weight
            pl.BlockSpec((1, CL), lambda: (0, 0)),               # conv bias (tiled)
            pl.BlockSpec((OH * NPAD, N * H), lambda: (0, 0)),    # h-pool/batch selector
            pl.BlockSpec((CL, PLANES), lambda: (0, 0)),          # w-pool matrix
            pl.BlockSpec((OH, PLANES, FPAD), lambda: (0, 0, 0)),  # fc1 weight slices
            pl.BlockSpec((1, FPAD), lambda: (0, 0)),             # fc1 bias
            pl.BlockSpec((FPAD, FPAD), lambda: (0, 0)),          # fc2 weight
            pl.BlockSpec((1, FPAD), lambda: (0, 0)),             # fc2 bias
        ],
        out_specs=pl.BlockSpec((NPAD, FPAD), lambda: (0, 0)),
        cost_estimate=pl.CostEstimate(flops=flops, transcendentals=0,
                                      bytes_accessed=bytes_accessed),
    )(xp2, prepped["wband"], prepped["bc"], prepped["sel"], prepped["rw"],
      prepped["w1s"], prepped["b1"], prepped["w2"], prepped["b2"])

    return out[:N, :OUT]


# ----------------------------------------------------------------------------
# Pure-JAX reference (PyTorch semantics) for correctness checking
# ----------------------------------------------------------------------------
def reference_forward(x, params):
    hi = jax.lax.Precision.HIGHEST
    out = jax.lax.conv_general_dilated(
        x.astype(jnp.float32), params["conv_w"], (1, 1), ((1, 1), (1, 1)),
        dimension_numbers=("NCHW", "OIHW", "NCHW"), precision=hi)
    out = jnp.maximum(out + params["conv_b"][None, :, None, None], 0.0)
    out = out.reshape(N, COUT, OH, PKH, OW, PKW).mean(axis=(3, 5))   # adaptive pool
    out = out.reshape(N, -1)                                         # (c, oh, ow)
    out = jnp.maximum(jnp.dot(out, params["fc1_w"], precision=hi)
                      + params["fc1_b"], 0.0)
    out = jnp.dot(out, params["fc2_w"], precision=hi) + params["fc2_b"]
    return out


if __name__ == "__main__":
    key = jax.random.PRNGKey(0)
    k_x, k_cw, k_cb, k_w1, k_b1, k_w2, k_b2 = jax.random.split(key, 7)

    x = jax.random.normal(k_x, (N, CIN, H, W), jnp.float32)

    params = {
        "conv_w": 0.1 * jax.random.normal(k_cw, (COUT, CIN, KH, KW), jnp.float32),
        "conv_b": 0.1 * jax.random.normal(k_cb, (COUT,), jnp.float32),
        "fc1_w": 0.1 * jax.random.normal(k_w1, (COUT * OH * OW, HIDDEN), jnp.float32),
        "fc1_b": 0.1 * jax.random.normal(k_b1, (HIDDEN,), jnp.float32),
        "fc2_w": 0.1 * jax.random.normal(k_w2, (HIDDEN, OUT), jnp.float32),
        "fc2_b": 0.1 * jax.random.normal(k_b2, (OUT,), jnp.float32),
    }

    prepped = prepare_params(params)          # one-time repack/pad, outside jit

    y = built_model_forward(x, prepped)
    y = jax.block_until_ready(y)

    y_ref = reference_forward(x, params)
    assert y.shape == (N, OUT), y.shape
    assert jnp.all(jnp.isfinite(y))
    # bf16 dot inputs (f32 accumulation) vs f32-HIGHEST reference: expected
    # max abs error is a few e-3 at these ~0.1-scale weights.
    assert jnp.allclose(y, y_ref, atol=2e-2, rtol=2e-2), (
        float(jnp.max(jnp.abs(y - y_ref))))
    print("KERNEL_OK")
</pallas_src>

<mosaic_0001>
module attributes {stable_mosaic.version = 11 : i64} {
  func.func @_fused_kernel(%arg0: memref<36x72xf32, #tpu.memory_space<vmem>>, %arg1: memref<3x72x128xbf16, #tpu.memory_space<vmem>>, %arg2: memref<1x128xf32, #tpu.memory_space<vmem>>, %arg3: memref<32x32xbf16, #tpu.memory_space<vmem>>, %arg4: memref<128x32xbf16, #tpu.memory_space<vmem>>, %arg5: memref<4x32x128xbf16, #tpu.memory_space<vmem>>, %arg6: memref<1x128xf32, #tpu.memory_space<vmem>>, %arg7: memref<128x128xbf16, #tpu.memory_space<vmem>>, %arg8: memref<1x128xf32, #tpu.memory_space<vmem>>, %arg9: memref<8x128xf32, #tpu.memory_space<vmem>>) attributes {dimension_semantics = [], scalar_prefetch = 0 : i64, scratch_operands = 0 : i64, tpu.core_type = #tpu.core_type<tc>} {
    %c0 = arith.constant 0 : index
    %c0_0 = arith.constant 0 : index
    %0 = vector.load %arg0[%c0, %c0_0] : memref<36x72xf32, #tpu.memory_space<vmem>>, vector<36x72xf32>
    %cst = arith.constant 0.000000e+00 : f32
    %1 = vector.broadcast %cst : f32 to vector<16x128xf32>
    %cst_1 = arith.constant 0.000000e+00 : f32
    %2 = vector.broadcast %cst_1 : f32 to vector<16x128xf32>
    %c0_2 = arith.constant 0 : index
    %c0_3 = arith.constant 0 : index
    %c0_4 = arith.constant 0 : index
    %3 = vector.load %arg1[%c0_2, %c0_3, %c0_4] : memref<3x72x128xbf16, #tpu.memory_space<vmem>>, vector<1x72x128xbf16>
    %4 = vector.shape_cast %3 : vector<1x72x128xbf16> to vector<72x128xbf16>
    %5 = vector.extract_strided_slice %0 {offsets = [0, 0], sizes = [16, 72], strides = [1, 1]} : vector<36x72xf32> to vector<16x72xf32>
    %6 = arith.truncf %5 : vector<16x72xf32> to vector<16x72xbf16>
    %7 = vector.extract_strided_slice %0 {offsets = [18, 0], sizes = [16, 72], strides = [1, 1]} : vector<36x72xf32> to vector<16x72xf32>
    %8 = arith.truncf %7 : vector<16x72xf32> to vector<16x72xbf16>
    %cst_5 = arith.constant dense<0.000000e+00> : vector<16x128xf32>
    %9 = tpu.matmul %6, %4, %cst_5 {dimension_numbers = #tpu.dot_dimension_numbers<[1], [0], [0], [1], [0, 0, 1, 1], [], []>} : vector<16x72xbf16>, vector<72x128xbf16>, vector<16x128xf32> -> vector<16x128xf32>
    %10 = arith.addf %1, %9 : vector<16x128xf32>
    %cst_6 = arith.constant dense<0.000000e+00> : vector<16x128xf32>
    %11 = tpu.matmul %8, %4, %cst_6 {dimension_numbers = #tpu.dot_dimension_numbers<[1], [0], [0], [1], [0, 0, 1, 1], [], []>} : vector<16x72xbf16>, vector<72x128xbf16>, vector<16x128xf32> -> vector<16x128xf32>
    %12 = arith.addf %2, %11 : vector<16x128xf32>
    %c1 = arith.constant 1 : index
    %c0_7 = arith.constant 0 : index
    %c0_8 = arith.constant 0 : index
    %13 = vector.load %arg1[%c1, %c0_7, %c0_8] : memref<3x72x128xbf16, #tpu.memory_space<vmem>>, vector<1x72x128xbf16>
    %14 = vector.shape_cast %13 : vector<1x72x128xbf16> to vector<72x128xbf16>
    %15 = vector.extract_strided_slice %0 {offsets = [1, 0], sizes = [16, 72], strides = [1, 1]} : vector<36x72xf32> to vector<16x72xf32>
    %16 = arith.truncf %15 : vector<16x72xf32> to vector<16x72xbf16>
    %17 = vector.extract_strided_slice %0 {offsets = [19, 0], sizes = [16, 72], strides = [1, 1]} : vector<36x72xf32> to vector<16x72xf32>
    %18 = arith.truncf %17 : vector<16x72xf32> to vector<16x72xbf16>
    %cst_9 = arith.constant dense<0.000000e+00> : vector<16x128xf32>
    %19 = tpu.matmul %16, %14, %cst_9 {dimension_numbers = #tpu.dot_dimension_numbers<[1], [0], [0], [1], [0, 0, 1, 1], [], []>} : vector<16x72xbf16>, vector<72x128xbf16>, vector<16x128xf32> -> vector<16x128xf32>
    %20 = arith.addf %10, %19 : vector<16x128xf32>
    %cst_10 = arith.constant dense<0.000000e+00> : vector<16x128xf32>
    %21 = tpu.matmul %18, %14, %cst_10 {dimension_numbers = #tpu.dot_dimension_numbers<[1], [0], [0], [1], [0, 0, 1, 1], [], []>} : vector<16x72xbf16>, vector<72x128xbf16>, vector<16x128xf32> -> vector<16x128xf32>
    %22 = arith.addf %12, %21 : vector<16x128xf32>
    %c2 = arith.constant 2 : index
    %c0_11 = arith.constant 0 : index
    %c0_12 = arith.constant 0 : index
    %23 = vector.load %arg1[%c2, %c0_11, %c0_12] : memref<3x72x128xbf16, #tpu.memory_space<vmem>>, vector<1x72x128xbf16>
    %24 = vector.shape_cast %23 : vector<1x72x128xbf16> to vector<72x128xbf16>
    %25 = vector.extract_strided_slice %0 {offsets = [2, 0], sizes = [16, 72], strides = [1, 1]} : vector<36x72xf32> to vector<16x72xf32>
    %26 = arith.truncf %25 : vector<16x72xf32> to vector<16x72xbf16>
    %27 = vector.extract_strided_slice %0 {offsets = [20, 0], sizes = [16, 72], strides = [1, 1]} : vector<36x72xf32> to vector<16x72xf32>
    %28 = arith.truncf %27 : vector<16x72xf32> to vector<16x72xbf16>
    %cst_13 = arith.constant dense<0.000000e+00> : vector<16x128xf32>
    %29 = tpu.matmul %26, %24, %cst_13 {dimension_numbers = #tpu.dot_dimension_numbers<[1], [0], [0], [1], [0, 0, 1, 1], [], []>} : vector<16x72xbf16>, vector<72x128xbf16>, vector<16x128xf32> -> vector<16x128xf32>
    %30 = arith.addf %20, %29 : vector<16x128xf32>
    %cst_14 = arith.constant dense<0.000000e+00> : vector<16x128xf32>
    %31 = tpu.matmul %28, %24, %cst_14 {dimension_numbers = #tpu.dot_dimension_numbers<[1], [0], [0], [1], [0, 0, 1, 1], [], []>} : vector<16x72xbf16>, vector<72x128xbf16>, vector<16x128xf32> -> vector<16x128xf32>
    %32 = arith.addf %22, %31 : vector<16x128xf32>
    %33 = tpu.concatenate %30, %32 in 0 : vector<16x128xf32>, vector<16x128xf32> -> vector<32x128xf32>
    %c0_15 = arith.constant 0 : index
    %c0_16 = arith.constant 0 : index
    %34 = vector.load %arg2[%c0_15, %c0_16] : memref<1x128xf32, #tpu.memory_space<vmem>>, vector<1x128xf32>
    %35 = vector.broadcast %34 : vector<1x128xf32> to vector<32x128xf32>
    %36 = arith.addf %33, %35 : vector<32x128xf32>
    %cst_17 = arith.constant 0.000000e+00 : f32
    %37 = vector.broadcast %cst_17 : f32 to vector<32x128xf32>
    %38 = arith.maximumf %36, %37 : vector<32x128xf32>
    %39 = arith.truncf %38 : vector<32x128xf32> to vector<32x128xbf16>
    %c0_18 = arith.constant 0 : index
    %c0_19 = arith.constant 0 : index
    %40 = vector.load %arg4[%c0_18, %c0_19] : memref<128x32xbf16, #tpu.memory_space<vmem>>, vector<128x32xbf16>
    %cst_20 = arith.constant dense<0.000000e+00> : vector<32x32xf32>
    %41 = tpu.matmul %39, %40, %cst_20 {dimension_numbers = #tpu.dot_dimension_numbers<[1], [0], [0], [1], [0, 0, 1, 1], [], []>} : vector<32x128xbf16>, vector<128x32xbf16>, vector<32x32xf32> -> vector<32x32xf32>
    %c0_21 = arith.constant 0 : index
    %c0_22 = arith.constant 0 : index
    %42 = vector.load %arg3[%c0_21, %c0_22] : memref<32x32xbf16, #tpu.memory_space<vmem>>, vector<32x32xbf16>
    %43 = arith.truncf %41 : vector<32x32xf32> to vector<32x32xbf16>
    %cst_23 = arith.constant dense<0.000000e+00> : vector<32x32xf32>
    %44 = tpu.matmul %42, %43, %cst_23 {dimension_numbers = #tpu.dot_dimension_numbers<[1], [0], [0], [1], [0, 0, 1, 1], [], []>} : vector<32x32xbf16>, vector<32x32xbf16>, vector<32x32xf32> -> vector<32x32xf32>
    %cst_24 = arith.constant 0.000000e+00 : f32
    %45 = vector.broadcast %cst_24 : f32 to vector<8x128xf32>
    %46 = vector.extract_strided_slice %44 {offsets = [0, 0], sizes = [8, 32], strides = [1, 1]} : vector<32x32xf32> to vector<8x32xf32>
    %47 = arith.truncf %46 : vector<8x32xf32> to vector<8x32xbf16>
    %c0_25 = arith.constant 0 : index
    %c0_26 = arith.constant 0 : index
    %c0_27 = arith.constant 0 : index
    %48 = vector.load %arg5[%c0_25, %c0_26, %c0_27] : memref<4x32x128xbf16, #tpu.memory_space<vmem>>, vector<1x32x128xbf16>
    %49 = vector.shape_cast %48 : vector<1x32x128xbf16> to vector<32x128xbf16>
    %cst_28 = arith.constant dense<0.000000e+00> : vector<8x128xf32>
    %50 = tpu.matmul %47, %49, %cst_28 {dimension_numbers = #tpu.dot_dimension_numbers<[1], [0], [0], [1], [0, 0, 1, 1], [], []>} : vector<8x32xbf16>, vector<32x128xbf16>, vector<8x128xf32> -> vector<8x128xf32>
    %51 = arith.addf %45, %50 : vector<8x128xf32>
    %52 = vector.extract_strided_slice %44 {offsets = [8, 0], sizes = [8, 32], strides = [1, 1]} : vector<32x32xf32> to vector<8x32xf32>
    %53 = arith.truncf %52 : vector<8x32xf32> to vector<8x32xbf16>
    %c1_29 = arith.constant 1 : index
    %c0_30 = arith.constant 0 : index
    %c0_31 = arith.constant 0 : index
    %54 = vector.load %arg5[%c1_29, %c0_30, %c0_31] : memref<4x32x128xbf16, #tpu.memory_space<vmem>>, vector<1x32x128xbf16>
    %55 = vector.shape_cast %54 : vector<1x32x128xbf16> to vector<32x128xbf16>
    %cst_32 = arith.constant dense<0.000000e+00> : vector<8x128xf32>
    %56 = tpu.matmul %53, %55, %cst_32 {dimension_numbers = #tpu.dot_dimension_numbers<[1], [0], [0], [1], [0, 0, 1, 1], [], []>} : vector<8x32xbf16>, vector<32x128xbf16>, vector<8x128xf32> -> vector<8x128xf32>
    %57 = arith.addf %51, %56 : vector<8x128xf32>
    %58 = vector.extract_strided_slice %44 {offsets = [16, 0], sizes = [8, 32], strides = [1, 1]} : vector<32x32xf32> to vector<8x32xf32>
    %59 = arith.truncf %58 : vector<8x32xf32> to vector<8x32xbf16>
    %c2_33 = arith.constant 2 : index
    %c0_34 = arith.constant 0 : index
    %c0_35 = arith.constant 0 : index
    %60 = vector.load %arg5[%c2_33, %c0_34, %c0_35] : memref<4x32x128xbf16, #tpu.memory_space<vmem>>, vector<1x32x128xbf16>
    %61 = vector.shape_cast %60 : vector<1x32x128xbf16> to vector<32x128xbf16>
    %cst_36 = arith.constant dense<0.000000e+00> : vector<8x128xf32>
    %62 = tpu.matmul %59, %61, %cst_36 {dimension_numbers = #tpu.dot_dimension_numbers<[1], [0], [0], [1], [0, 0, 1, 1], [], []>} : vector<8x32xbf16>, vector<32x128xbf16>, vector<8x128xf32> -> vector<8x128xf32>
    %63 = arith.addf %57, %62 : vector<8x128xf32>
    %64 = vector.extract_strided_slice %44 {offsets = [24, 0], sizes = [8, 32], strides = [1, 1]} : vector<32x32xf32> to vector<8x32xf32>
    %65 = arith.truncf %64 : vector<8x32xf32> to vector<8x32xbf16>
    %c3 = arith.constant 3 : index
    %c0_37 = arith.constant 0 : index
    %c0_38 = arith.constant 0 : index
    %66 = vector.load %arg5[%c3, %c0_37, %c0_38] : memref<4x32x128xbf16, #tpu.memory_space<vmem>>, vector<1x32x128xbf16>
    %67 = vector.shape_cast %66 : vector<1x32x128xbf16> to vector<32x128xbf16>
    %cst_39 = arith.constant dense<0.000000e+00> : vector<8x128xf32>
    %68 = tpu.matmul %65, %67, %cst_39 {dimension_numbers = #tpu.dot_dimension_numbers<[1], [0], [0], [1], [0, 0, 1, 1], [], []>} : vector<8x32xbf16>, vector<32x128xbf16>, vector<8x128xf32> -> vector<8x128xf32>
    %69 = arith.addf %63, %68 : vector<8x128xf32>
    %c0_40 = arith.constant 0 : index
    %c0_41 = arith.constant 0 : index
    %70 = vector.load %arg6[%c0_40, %c0_41] : memref<1x128xf32, #tpu.memory_space<vmem>>, vector<1x128xf32>
    %71 = vector.broadcast %70 : vector<1x128xf32> to vector<8x128xf32>
    %72 = arith.addf %69, %71 : vector<8x128xf32>
    %cst_42 = arith.constant 0.000000e+00 : f32
    %73 = vector.broadcast %cst_42 : f32 to vector<8x128xf32>
    %74 = arith.maximumf %72, %73 : vector<8x128xf32>
    %75 = arith.truncf %74 : vector<8x128xf32> to vector<8x128xbf16>
    %c0_43 = arith.constant 0 : index
    %c0_44 = arith.constant 0 : index
    %76 = vector.load %arg7[%c0_43, %c0_44] : memref<128x128xbf16, #tpu.memory_space<vmem>>, vector<128x128xbf16>
    %cst_45 = arith.constant dense<0.000000e+00> : vector<8x128xf32>
    %77 = tpu.matmul %75, %76, %cst_45 {dimension_numbers = #tpu.dot_dimension_numbers<[1], [0], [0], [1], [0, 0, 1, 1], [], []>} : vector<8x128xbf16>, vector<128x128xbf16>, vector<8x128xf32> -> vector<8x128xf32>
    %c0_46 = arith.constant 0 : index
    %c0_47 = arith.constant 0 : index
    %78 = vector.load %arg8[%c0_46, %c0_47] : memref<1x128xf32, #tpu.memory_space<vmem>>, vector<1x128xf32>
    %79 = vector.broadcast %78 : vector<1x128xf32> to vector<8x128xf32>
    %80 = arith.addf %77, %79 : vector<8x128xf32>
    %c0_48 = arith.constant 0 : index
    %c0_49 = arith.constant 0 : index
    %81 = vector.load %arg9[%c0_48, %c0_49] : memref<8x128xf32, #tpu.memory_space<vmem>>, vector<8x128xf32>
    tpu.vector_store %arg9[%c0_48, %c0_49], %80 {strides = array<i32>} : memref<8x128xf32, #tpu.memory_space<vmem>>, vector<8x128xf32>,
    return
  }
}

</mosaic_0001>

<bundles_post_ra>
// kernel: built_model_forward.1
= control target key start
LH: loop header
LB: loop body
LE: loop exit
PB: predicated region body
PF: predicated region fallthrough
CT: control target
= control target key end

     0   :  { %v1413_v0 = vmov 0.0   ;;  %vm1414_vm0 = vmmov 0   ;;  %vm105_vm1 = vcmask 1043456   ;;  %vm61_vm2 = vsmask.f32 7424  ;;  %s1722_s1 = inlined_call_operand.vmem [shape: bf16[3,72,128], index: 1, kind: input, shape index: {}]   ;;  %s1723_s0 = inlined_call_operand.vmem [shape: f32[36,72], index: 0, kind: input, shape index: {}]   ;;  %s1724_s4 = inlined_call_operand.vmem [shape: bf16[128,32], index: 4, kind: input, shape index: {}]   ;;  %s1725_s2 = inlined_call_operand.vmem [shape: f32[1,128], index: 2, kind: input, shape index: {}]   ;;  %s1726_s3 = inlined_call_operand.vmem [shape: bf16[32,32], index: 3, kind: input, shape index: {}]   ;;  %s1727_s5 = inlined_call_operand.vmem [shape: bf16[4,32,128], index: 5, kind: input, shape index: {}]   ;;  %s1728_s7 = inlined_call_operand.vmem [shape: bf16[128,128], index: 7, kind: input, shape index: {}]   ;;  %s1729_s6 = inlined_call_operand.vmem [shape: f32[1,128], index: 6, kind: input, shape index: {}]   ;;  %s1730_s8 = inlined_call_operand.vmem [shape: f32[1,128], index: 8, kind: input, shape index: {}]   ;;  %s1731_s9 = inlined_call_operand.vmem [shape: f32[8,128], index: 9, kind: output, shape index: {}]  }
   0x1   :  { %1206 = vmatprep.subr.bf16.mxu0 %v1413_v0  ;;  %1220 = vmatprep.subr.bf16.mxu1 %v1413_v0  ;;  %v1372_v1 = vld [vmem:[%s1722_s1 + $0x24] sm:$0xff]   ;;  %v1374_v3 = vld [vmem:[%s1722_s1 + $0x2c] sm:$0xff]   ;;  %v1376_v5 = vld [vmem:[%s1722_s1 + $0x34] sm:$0xff]   ;;  %vm101_vm3 = vcmask 588800   ;;  %vm223_vm4 = vsmask.f32 6400 }
   0x2   :  { %v1373_v2 = vld [vmem:[%s1722_s1] sm:$0xff]   ;;  %1216 = vmatprep.mubr.msk.bf16.mxu0 %vm1414_vm0, %v1413_v0  ;;  %1230 = vmatprep.mubr.msk.bf16.mxu1 %vm1414_vm0, %v1413_v0  ;;  %v1375_v4 = vld [vmem:[%s1722_s1 + $0x8] sm:$0xff]   ;;  %v1377_v6 = vld [vmem:[%s1722_s1 + $0x10] sm:$0xff]   ;;  %vm287_vm5 = vcmask 1046528   ;;  %vm426_vm6 = vcmask 1045504   ;;  %vm622_vm7 = vcmask 261120  }
   0x3   :  { %1207 = vmatpush3.bf16.msra.mxu0 %v1372_v1  ;;  %1221 = vmatpush3.bf16.msra.mxu1 %v1373_v2  ;;  %v1378_v7 = vld [vmem:[%s1722_s1 + $0x3c] sm:$0xff]   ;;  %v34_v9 = vld [vmem:[%s1723_s0 + $0x8] sm:$0xff]  ;;  %v1380_v11 = vld [vmem:[%s1722_s1 + $0x44] ss:$0 sps:$4 sm:$0xff]  }
   0x4   :  { %1208 = vmatprep.subr.bf16.mxu0 %v1413_v0  ;;  %1222 = vmatprep.subr.bf16.mxu1 %v1413_v0  ;;  %v33_v8 = vld [vmem:[%s1723_s0] sm:$0xff]  ;;  %v1379_v10 = vld [vmem:[%s1722_s1 + $0x18] sm:$0xff]   ;;  %v35_v12 = vld [vmem:[%s1723_s0 + $0x10] sm:$0xff]  ;;  %v107_v20 = vsel %vm105_vm1, %v1380_v11, 0 }
   0x5   :  { %v1511_v13 = vpack.c.bf16 %v34_v9, %v33_v8  ;;  %v1381_v14 = vld [vmem:[%s1722_s1 + $0x20] ss:$0 sps:$4 sm:$0xff]   ;;  %v1517_v15 = vpack.c.bf16 %v35_v12, %v35_v12  ;;  %v36_v25 = vld [vmem:[%s1723_s0 + $0x18] sm:$0xff]  ;;  %v1382_v42 = vld [vmem:[%s1722_s1 + $0x48] sm:$0xff]  }
   0x6   :  { %v180_v22 = vsel %vm105_vm1, %v1381_v14, 0  ;;  %v37_v26 = vld [vmem:[%s1723_s0 + $0x20] sm:$0xf]  ;;  %v1536_v27 = vpack.c.bf16 %v36_v25, %v35_v12  ;;  %v1383_v44 = vld [vmem:[%s1722_s1 + $0x50] sm:$0xff]   ;;  %v1384_v45 = vld [vmem:[%s1722_s1 + $0x58] sm:$0xff]  }
   0x7   :  { %1209 = vmatpush3.bf16.msra.mxu0 %v1374_v3  ;;  %1223 = vmatpush3.bf16.msra.mxu1 %v1375_v4  ;;  %v63_v16 = vshrl.u32 %v1511_v13, 16  ;;  %v65_v17 = vshll.u32 %v1511_v13, 16  ;;  %v70_v18 = vshll.u32 %v1517_v15, 16  ;;  %v1540_v28 = vpack.c.bf16 %v37_v26, %v37_v26  ;;  %v1385_v46 = vld [vmem:[%s1722_s1 + $0x60] sm:$0xff]   ;;  %v1386_v47 = vld [vmem:[%s1722_s1 + $0x68] ss:$0 sps:$4 sm:$0xff]  }
   0x8   :  { %1210 = vmatprep.subr.bf16.mxu0 %v1413_v0  ;;  %1224 = vmatprep.subr.bf16.mxu1 %v1413_v0  ;;  %v225_v29 = vshrl.u32 %v1536_v27, 16  ;;  %v228_v30 = vshll.u32 %v1536_v27, 16  ;;  %v288_v39 = vrot.slane %v1536_v27, 1  ;;  %v347_v48 = vrot.slane %v1511_v13, 1  ;;  %v1387_v55 = vld [vmem:[%s1724_s4] sm:$0xff]   ;;  %v1388_v56 = vld [vmem:[%s1724_s4 + $0x8] sm:$0xff]  }
   0x9   :  { %v67_v19 = vrot.slane %v65_v17, 1  ;;  %v72_v21 = vrot.slane %v70_v18, 1  ;;  %v233_v31 = vshrl.u32 %v1540_v28, 16  ;;  %v236_v32 = vshll.u32 %v1540_v28, 16  ;;  %v1389_v57 = vld [vmem:[%s1724_s4 + $0x10] sm:$0xff]   ;;  %v1390_v58 = vld [vmem:[%s1724_s4 + $0x18] sm:$0xff]  }
   0xa   :  { %v227_v33 = vrot.slane %v225_v29, 1  ;;  %v230_v34 = vrot.slane %v228_v30, 2  ;;  %v289_v40 = vrot.slane %v1540_v28, 1  ;;  %v348_v49 = vrot.slane %v1517_v15, 1  ;;  %v1391_v59 = vld [vmem:[%s1724_s4 + $0x20] sm:$0xff]   ;;  %v1392_v60 = vld [vmem:[%s1724_s4 + $0x28] sm:$0xff]  }
   0xb   :  { %1211 = vmatpush3.bf16.msra.mxu0 %v1376_v5  ;;  %1225 = vmatpush3.bf16.msra.mxu1 %v1377_v6  ;;  %v68_v23 = vor.u32 %v67_v19, %v63_v16  ;;  %v235_v35 = vrot.slane %v233_v31, 1  ;;  %v238_v36 = vrot.slane %v236_v32, 2  ;;  %v381_v50 = vsel %vm105_vm1, %v1386_v47, 0  ;;  %v1393_v61 = vld [vmem:[%s1724_s4 + $0x30] sm:$0xff]   ;;  %v1394_v62 = vld [vmem:[%s1724_s4 + $0x38] sm:$0xff]  }
   0xc   :  { %1212 = vmatprep.subr.bf16.mxu0 %v1413_v0  ;;  %1226 = vmatprep.subr.bf16.mxu1 %v1413_v0  ;;  %v231_v37 = vor.u32 %v230_v34, %v227_v33  ;;  %v290_v43 = vsel %vm287_vm5, %v288_v39, %v289_v40  ;;  %v427_v51 = vrot.slane %v1536_v27, 2  ;;  %v428_v52 = vrot.slane %v1540_v28, 2 }
   0xd   :  { %v73_v24 = vsel %vm61_vm2, %v68_v23, %v72_v21  ;;  %v239_v38 = vor.u32 %v238_v36, %v235_v35  ;;  %v349_v53 = vsel %vm287_vm5, %v347_v48, %v348_v49  ;;  %v1088_v21 = vld [vmem:[%s1725_s2] ss:$0 sm:$0xff] }
   0xe   :  { %v429_v54 = vsel %vm426_vm6, %v427_v51, %v428_v52  ;;  %v1396_v51 = vld [vmem:[%s1726_s3 + $0x8] sm:$0xff]   ;;  %v1397_v52 = vld [vmem:[%s1727_s5 + $0x30] sm:$0xff]  }
   0xf   :  { %1213 = vmatpush3.bf16.msra.mxu0 %v1378_v7  ;;  %1227 = vmatpush3.bf16.msra.mxu1 %v1379_v10  ;;  %v240_v41 = vsel %vm223_vm4, %v231_v37, %v239_v38 }
  0x10   :  { %1214 = vmatprep.subr.bf16.mxu0 %v1413_v0  ;;  %1228 = vmatprep.subr.bf16.mxu1 %v1413_v0 }
  0x13   :  { %1215 = vmatpush3.bf16.msra.mxu0 %v107_v20  ;;  %1229 = vmatpush3.bf16.msra.mxu1 %v180_v22 }
  0x14   :  { %1234 = vmatprep.subr.bf16.mxu0 %v1413_v0  ;;  %1248 = vmatprep.subr.bf16.mxu1 %v1413_v0 }
  0x16   :  { %1217 = vmatmul.mubr.msk.bf16.vlgmr.msra.gmra.mrb[0].mxu0 %vm101_vm3, %v73_v24  ;;  %1231 = vmatmul.mubr.msk.bf16.vlgmr.msra.gmra.mrb[0].mxu1 %vm101_vm3, %v1511_v13 }
  0x17   :  { %1235 = vmatpush3.bf16.msra.mxu0 %v1372_v1  ;;  %1249 = vmatpush3.bf16.msra.mxu1 %v1373_v2 }
  0x18   :  { %1236 = vmatprep.subr.bf16.mxu0 %v1413_v0  ;;  %1250 = vmatprep.subr.bf16.mxu1 %v1413_v0 }
  0x19   :  { %1244 = vmatprep.mubr.msk.bf16.mxu0 %vm1414_vm0, %v1413_v0  ;;  %1258 = vmatprep.mubr.msk.bf16.mxu1 %vm1414_vm0, %v1413_v0 }
  0x1b   :  { %1237 = vmatpush3.bf16.msra.mxu0 %v1374_v3  ;;  %1251 = vmatpush3.bf16.msra.mxu1 %v1375_v4 }
  0x1c   :  { %1238 = vmatprep.subr.bf16.mxu0 %v1413_v0  ;;  %1252 = vmatprep.subr.bf16.mxu1 %v1413_v0 }
  0x1f   :  { %1239 = vmatpush3.bf16.msra.mxu0 %v1376_v5  ;;  %1253 = vmatpush3.bf16.msra.mxu1 %v1377_v6 }
  0x20   :  { %1240 = vmatprep.subr.bf16.mxu0 %v1413_v0  ;;  %1254 = vmatprep.subr.bf16.mxu1 %v1413_v0 }
  0x23   :  { %1241 = vmatpush3.bf16.msra.mxu0 %v1378_v7  ;;  %1255 = vmatpush3.bf16.msra.mxu1 %v1379_v10 }
  0x24   :  { %1242 = vmatprep.subr.bf16.mxu0 %v1413_v0  ;;  %1256 = vmatprep.subr.bf16.mxu1 %v1413_v0 }
  0x27   :  { %1243 = vmatpush3.bf16.msra.mxu0 %v107_v20  ;;  %1257 = vmatpush3.bf16.msra.mxu1 %v180_v22 }
  0x28   :  { %1262 = vmatprep.subr.bf16.mxu0 %v1413_v0  ;;  %1276 = vmatprep.subr.bf16.mxu1 %v1413_v0 }
  0x2a   :  { %1245 = vmatmul.mubr.msk.bf16.vlgmr.msra.gmra.mrb[4].mxu0 %vm101_vm3, %v240_v41  ;;  %1259 = vmatmul.mubr.msk.bf16.vlgmr.msra.gmra.mrb[4].mxu1 %vm101_vm3, %v290_v43  ;;  %v1395_v43 = vld [vmem:[%s1726_s3] sm:$0xff]  }
  0x2b   :  { %1263 = vmatpush3.bf16.msra.mxu0 %v1382_v42  ;;  %1277 = vmatpush3.bf16.msra.mxu1 %v1382_v42 }
  0x2c   :  { %1264 = vmatprep.subr.bf16.mxu0 %v1413_v0  ;;  %1278 = vmatprep.subr.bf16.mxu1 %v1413_v0 }
  0x2d   :  { %1272 = vmatprep.mubr.msk.bf16.mxu0 %vm1414_vm0, %v1413_v0  ;;  %1286 = vmatprep.mubr.msk.bf16.mxu1 %vm1414_vm0, %v1413_v0 }
  0x2f   :  { %1265 = vmatpush3.bf16.msra.mxu0 %v1383_v44  ;;  %1279 = vmatpush3.bf16.msra.mxu1 %v1383_v44  ;;  %v1398_v44 = vld [vmem:[%s1727_s5 + $0x10] sm:$0xff]  }
  0x30   :  { %1266 = vmatprep.subr.bf16.mxu0 %v1413_v0  ;;  %1280 = vmatprep.subr.bf16.mxu1 %v1413_v0 }
  0x33   :  { %1267 = vmatpush3.bf16.msra.mxu0 %v1384_v45  ;;  %1281 = vmatpush3.bf16.msra.mxu1 %v1384_v45 }
  0x34   :  { %1268 = vmatprep.subr.bf16.mxu0 %v1413_v0  ;;  %1282 = vmatprep.subr.bf16.mxu1 %v1413_v0 }
  0x37   :  { %1269 = vmatpush3.bf16.msra.mxu0 %v1385_v46  ;;  %1283 = vmatpush3.bf16.msra.mxu1 %v1385_v46 }
  0x38   :  { %1270 = vmatprep.subr.bf16.mxu0 %v1413_v0  ;;  %1284 = vmatprep.subr.bf16.mxu1 %v1413_v0 }
  0x3b   :  { %1271 = vmatpush3.bf16.msra.mxu0 %v381_v50  ;;  %1285 = vmatpush3.bf16.msra.mxu1 %v381_v50 }
  0x3c   :  { %1318 = vmatprep.subr.bf16.mxu1 %v1413_v0  ;;  %1290 = vmatprep.subr.bf16.mxu0 %v1387_v55 }
  0x3e   :  { %1273 = vmatmul.mubr.msk.bf16.vlgmr.msra.gmra.mrb[8].mxu0 %vm101_vm3, %v349_v53  ;;  %1287 = vmatmul.mubr.msk.bf16.vlgmr.msra.gmra.mrb[8].mxu1 %vm101_vm3, %v429_v54  ;;  %v1399_v53 = vld [vmem:[%s1727_s5 + $0x38] sm:$0xff]  }
  0x3f   :  { %1322 = vmatprep.mubr.msk.bf16.mxu1 %vm1414_vm0, %v1413_v0  ;;  %1291 = vmatpush3.bf16.msra.mxu0 %v1387_v55  ;;  %v1400_v54 = vld [vmem:[%s1727_s5 + $0x18] sm:$0xff]  }
  0x40   :  { %1292 = vmatprep.subr.bf16.mxu0 %v1388_v56  ;;  %1319 = vmatpush3.bf16.msra.mxu1 %v1398_v44 }
  0x41   :  { %1320 = vmatprep.subr.bf16.mxu1 %v1413_v0 }
  0x43   :  { %1293 = vmatpush3.bf16.msra.mxu0 %v1388_v56 }
  0x44   :  { %1294 = vmatprep.subr.bf16.mxu0 %v1389_v57  ;;  %1321 = vmatpush3.bf16.msra.mxu1 %v1400_v54 }
  0x45   :  { %1326 = vmatprep.subr.bf16.mxu1 %v1413_v0 }
  0x47   :  { %1295 = vmatpush3.bf16.msra.mxu0 %v1389_v57 }
  0x48   :  { %1296 = vmatprep.subr.bf16.mxu0 %v1390_v58 }
  0x4b   :  { %1297 = vmatpush3.bf16.msra.mxu0 %v1390_v58 }
  0x4c   :  { %1298 = vmatprep.subr.bf16.mxu0 %v1391_v59 }
  0x4f   :  { %1299 = vmatpush3.bf16.msra.mxu0 %v1391_v59 }
  0x50   :  { %1300 = vmatprep.subr.bf16.mxu0 %v1392_v60 }
  0x53   :  { %1301 = vmatpush3.bf16.msra.mxu0 %v1392_v60  ;;  %v1401_v60 = vld [vmem:[%s1727_s5] sm:$0xff]  }
  0x54   :  { %1302 = vmatprep.subr.bf16.mxu0 %v1393_v61 }
  0x57   :  { %1303 = vmatpush3.bf16.msra.mxu0 %v1393_v61 }
  0x58   :  { %1304 = vmatprep.subr.bf16.mxu0 %v1394_v62 }
  0x5b   :  { %1305 = vmatpush3.bf16.msra.mxu0 %v1394_v62  ;;  %v1402_v62 = vld [vmem:[%s1727_s5 + $0x8] sm:$0xff]  }
  0xe9   :  { %v143_v63 = vpop.f32.mrb[0].mxu0  ;;  %v216_v1 = vpop.f32.mrb[0].mxu1 }
  0xea   :  { %v1218_v2 = vpop.f32.mrb[1].mxu0  ;;  %v217_v3 = vadd.f32 %v216_v1, %v143_v63  ;;  %v1232_v4 = vpop.f32.mrb[1].mxu1  ;;  %v1403_v63 = vld [vmem:[%s1727_s5 + $0x20] sm:$0xff]  }
  0xeb   :  { %v146_v5 = vpop.f32.mrb[2].mxu0  ;;  %v219_v6 = vpop.f32.mrb[2].mxu1  ;;  %v1404_v2 = vld [vmem:[%s1727_s5 + $0x28] sm:$0xff]  }
  0xec   :  { %v1219_v7 = vpop.f32.mrb[3].mxu0  ;;  %v220_v8 = vadd.f32 %v219_v6, %v146_v5  ;;  %v1233_v9 = vpop.f32.mrb[3].mxu1  ;;  %v1406_v5 = vld [vmem:[%s1728_s7 + $0x8] sm:$0xff]   ;;  %v1407_v6 = vld [vmem:[%s1728_s7 + $0x10] sm:$0xff]  }
  0xed   :  { %v1408_v7 = vld [vmem:[%s1728_s7 + $0x18] sm:$0xff]   ;;  %v1410_v9 = vld [vmem:[%s1728_s7 + $0x28] sm:$0xff]  }
  0xfd   :  { %v278_v10 = vpop.f32.mrb[4].mxu0  ;;  %v328_v11 = vpop.f32.mrb[4].mxu1 }
  0xfe   :  { %v1246_v12 = vpop.f32.mrb[5].mxu0  ;;  %v329_v13 = vadd.f32 %v328_v11, %v278_v10  ;;  %v1260_v14 = vpop.f32.mrb[5].mxu1  ;;  %v1411_v10 = vld [vmem:[%s1728_s7 + $0x30] sm:$0xff]   ;;  %v1412_v11 = vld [vmem:[%s1728_s7 + $0x38] sm:$0xff]  }
  0xff   :  { %v281_v15 = vpop.f32.mrb[6].mxu0  ;;  %v331_v16 = vpop.f32.mrb[6].mxu1 }
 0x100   :  { %v1247_v17 = vpop.f32.mrb[7].mxu0  ;;  %v332_v18 = vadd.f32 %v331_v16, %v281_v15  ;;  %v1261_v19 = vpop.f32.mrb[7].mxu1 }
 0x111   :  { %v417_v20 = vpop.f32.mrb[8].mxu0  ;;  %v467_v23 = vpop.f32.mrb[8].mxu1 }
 0x112   :  { %v424_v22 = vadd.f32 %v417_v20, %v217_v3  ;;  %v1274_v24 = vpop.f32.mrb[9].mxu0  ;;  %v474_v25 = vadd.f32 %v467_v23, %v329_v13  ;;  %v1288_v26 = vpop.f32.mrb[9].mxu1  ;;  %v1405_v3 = vld [vmem:[%s1728_s7] sm:$0xff]  }
 0x113   :  { %v420_v27 = vpop.f32.mrb[10].mxu0  ;;  %v470_v30 = vpop.f32.mrb[10].mxu1 }
 0x114   :  { %v483_v28 = vadd.f32 %v1088_v21, %v424_v22  ;;  %v425_v29 = vadd.f32 %v420_v27, %v220_v8  ;;  %v1275_v31 = vpop.f32.mrb[11].mxu0  ;;  %v485_v32 = vadd.f32 %v1088_v21, %v474_v25  ;;  %v475_v33 = vadd.f32 %v470_v30, %v332_v18  ;;  %v1289_v34 = vpop.f32.mrb[11].mxu1  ;;  %v1409_v8 = vld [vmem:[%s1728_s7 + $0x20] sm:$0xff]  }
 0x115   :  { %v1125_v27 = vld [vmem:[%s1729_s6] ss:$0 sm:$0xff] }
 0x116   :  { %v484_v35 = vadd.f32 %v1088_v21, %v425_v29  ;;  %v486_v36 = vadd.f32 %v1088_v21, %v475_v33  ;;  %v487_v37 = vmax.f32 %v483_v28, 0.0  ;;  %v489_v39 = vmax.f32 %v485_v32, 0.0  ;;  %v1126_v34 = vld [vmem:[%s1730_s8] ss:$0 sm:$0xff] }
 0x118   :  { %v488_v38 = vmax.f32 %v484_v35, 0.0  ;;  %v490_v40 = vmax.f32 %v486_v36, 0.0 }
 0x11a   :  { %v491_v41 = vpack.c.bf16 %v488_v38, %v487_v37  ;;  %v492_v42 = vpack.c.bf16 %v490_v40, %v489_v39 }
 0x11c   :  { %1306 = vmatprep.mubr.bf16.mxu0 %v491_v41 }
 0x11d   :  { %1307 = vmatmul.mubr.bf16.vlgmr.msra.gmra.mrb[12].mxu0 %v492_v42 }
 0x11e   :  { %1314 = vmatprep.mubr.msk.bf16.mxu0 %vm622_vm7, %v1395_v43 }
 0x1f0   :  { %v1308_v45 = vpop.f32.mrb[12].mxu0 }
 0x1f1   :  { %v591_v46 = vpop.f32.mrb[13].mxu0 }
 0x1f2   :  { %v1309_v47 = vpop.f32.mrb[14].mxu0 }
 0x1f3   :  { %v611_v48 = vpack.c.bf16 %v1309_v47, %v1308_v45  ;;  %v594_v49 = vpop.f32.mrb[15].mxu0 }
 0x1f4   :  { %v610_v50 = vpack.c.bf16 %v594_v49, %v591_v46 }
 0x1f6   :  { %1310 = vmatprep.subr.bf16.mxu0 %v610_v50 }
 0x1f7   :  { %1311 = vmatpush3.bf16.msra.mxu0 %v610_v50 }
 0x1f8   :  { %1312 = vmatprep.subr.bf16.mxu0 %v611_v48 }
 0x1fb   :  { %1313 = vmatpush3.bf16.msra.mxu0 %v611_v48 }
 0x1fc   :  { %1342 = vmatprep.subr.bf16.mxu0 %v1413_v0 }
 0x1fe   :  { %1315 = vmatmul.mubr.msk.bf16.vlgmr.msra.gmra.mrb[16].mxu0 %vm622_vm7, %v1396_v51 }
 0x1ff   :  { %1343 = vmatpush3.bf16.msra.mxu0 %v1397_v52  ;;  %1346 = vmatprep.mubr.msk.bf16.mxu0 %vm1414_vm0, %v1413_v0 }
 0x200   :  { %1344 = vmatprep.subr.bf16.mxu0 %v1413_v0 }
 0x203   :  { %1345 = vmatpush3.bf16.msra.mxu0 %v1399_v53 }
 0x2d1   :  { %v1316_v55 = vpop.f32.mrb[16].mxu0 }
 0x2d2   :  { %v663_v56 = vpop.f32.mrb[17].mxu0  ;;  %v799_v4 = vpack.c.bf16 %v1316_v55, %v1316_v55 }
 0x2d3   :  { %v1317_v57 = vpop.f32.mrb[18].mxu0  ;;  %v678_v1 = vpack.c.bf16 %v663_v56, %v663_v56 }
 0x2d4   :  { %v861_v58 = vpack.c.bf16 %v1317_v57, %v1317_v57  ;;  %v666_v59 = vpop.f32.mrb[19].mxu0 }
 0x2d5   :  { %v683_v61 = vpack.c.bf16 %v666_v59, %v666_v59 }
 0x2d6   :  { %1347 = vmatmul.mubr.msk.bf16.vlgmr.msra.gmra.mrb[20].mxu0 %vm622_vm7, %v861_v58 }
 0x2d7   :  { %1323 = vmatmul.mubr.msk.bf16.vlgmr.msra.gmra.mrb[12].mxu1 %vm622_vm7, %v683_v61 }
 0x2d8   :  { %1327 = vmatpush3.bf16.msra.mxu1 %v1401_v60  ;;  %1330 = vmatprep.mubr.msk.bf16.mxu1 %vm1414_vm0, %v1413_v0 }
 0x2d9   :  { %1328 = vmatprep.subr.bf16.mxu1 %v1413_v0 }
 0x2dc   :  { %1329 = vmatpush3.bf16.msra.mxu1 %v1402_v62 }
 0x2dd   :  { %1334 = vmatprep.subr.bf16.mxu1 %v1413_v0 }
 0x2df   :  { %1331 = vmatmul.mubr.msk.bf16.vlgmr.msra.gmra.mrb[16].mxu1 %vm622_vm7, %v678_v1 }
 0x2e0   :  { %1335 = vmatpush3.bf16.msra.mxu1 %v1403_v63  ;;  %1338 = vmatprep.mubr.msk.bf16.mxu1 %vm1414_vm0, %v1413_v0 }
 0x2e1   :  { %1336 = vmatprep.subr.bf16.mxu1 %v1413_v0 }
 0x2e4   :  { %1337 = vmatpush3.bf16.msra.mxu1 %v1404_v2 }
 0x2e5   :  { %1350 = vmatprep.subr.bf16.mxu1 %v1413_v0 }
 0x2e7   :  { %1339 = vmatmul.mubr.msk.bf16.vlgmr.msra.gmra.mrb[20].mxu1 %vm622_vm7, %v799_v4 }
 0x2e8   :  { %1351 = vmatpush3.bf16.msra.mxu1 %v1405_v3  ;;  %1366 = vmatprep.mubr.msk.bf16.mxu1 %vm1414_vm0, %v1413_v0 }
 0x2e9   :  { %1352 = vmatprep.subr.bf16.mxu1 %v1413_v0 }
 0x2ec   :  { %1353 = vmatpush3.bf16.msra.mxu1 %v1406_v5 }
 0x2ed   :  { %1354 = vmatprep.subr.bf16.mxu1 %v1413_v0 }
 0x2f0   :  { %1355 = vmatpush3.bf16.msra.mxu1 %v1407_v6 }
 0x2f1   :  { %1356 = vmatprep.subr.bf16.mxu1 %v1413_v0 }
 0x2f4   :  { %1357 = vmatpush3.bf16.msra.mxu1 %v1408_v7 }
 0x2f5   :  { %1358 = vmatprep.subr.bf16.mxu1 %v1413_v0 }
 0x2f8   :  { %1359 = vmatpush3.bf16.msra.mxu1 %v1409_v8 }
 0x2f9   :  { %1360 = vmatprep.subr.bf16.mxu1 %v1413_v0 }
 0x2fc   :  { %1361 = vmatpush3.bf16.msra.mxu1 %v1410_v9 }
 0x2fd   :  { %1362 = vmatprep.subr.bf16.mxu1 %v1413_v0 }
 0x300   :  { %1363 = vmatpush3.bf16.msra.mxu1 %v1411_v10 }
 0x301   :  { %1364 = vmatprep.subr.bf16.mxu1 %v1413_v0 }
 0x304   :  { %1365 = vmatpush3.bf16.msra.mxu1 %v1412_v11 }
 0x3a9   :  { %v916_v12 = vpop.f32.mrb[20].mxu0 }
 0x3aa   :  { %v738_v13 = vpop.f32.mrb[12].mxu1  ;;  %v1348_v14 = vpop.f32.mrb[21].mxu0 }
 0x3ab   :  { %v1324_v15 = vpop.f32.mrb[13].mxu1  ;;  %v919_v16 = vpop.f32.mrb[22].mxu0 }
 0x3ac   :  { %v741_v17 = vpop.f32.mrb[14].mxu1  ;;  %v1349_v18 = vpop.f32.mrb[23].mxu0 }
 0x3ad   :  { %v1325_v19 = vpop.f32.mrb[15].mxu1 }
 0x3b2   :  { %v793_v20 = vpop.f32.mrb[16].mxu1 }
 0x3b3   :  { %v794_v21 = vadd.f32 %v793_v20, %v738_v13  ;;  %v1332_v22 = vpop.f32.mrb[17].mxu1 }
 0x3b4   :  { %v796_v23 = vpop.f32.mrb[18].mxu1 }
 0x3b5   :  { %v1333_v24 = vpop.f32.mrb[19].mxu1 }
 0x3ba   :  { %v854_v25 = vpop.f32.mrb[20].mxu1 }
 0x3bb   :  { %v860_v0 = vadd.f32 %v854_v25, %v794_v21  ;;  %v1340_v26 = vpop.f32.mrb[21].mxu1 }
 0x3bc   :  { %v857_v28 = vpop.f32.mrb[22].mxu1 }
 0x3bd   :  { %v922_v29 = vadd.f32 %v916_v12, %v860_v0  ;;  %v1341_v30 = vpop.f32.mrb[23].mxu1 }
 0x3bf   :  { %v930_v31 = vadd.f32 %v1125_v27, %v922_v29 }
 0x3c1   :  { %v931_v32 = vmax.f32 %v930_v31, 0.0 }
 0x3c3   :  { %v932_v33 = vpack.c.bf16 %v931_v32, %v931_v32 }
 0x3c5   :  { %1367 = vmatmul.mubr.bf16.vlgmr.msra.gmra.mrb[24].mxu1 %v932_v33 }
 0x498   :  { %v1038_v35 = vpop.f32.mrb[24].mxu1 }
 0x499   :  { %v1039_v36 = vadd.f32 %v1126_v34, %v1038_v35  ;;  %v1368_v37 = vpop.f32.mrb[25].mxu1 }
 0x49a   :  { %v1041_v38 = vpop.f32.mrb[26].mxu1 }
 0x49b   :  { %1044 = vst [vmem:[%s1731_s9] sm:$0xff] %v1039_v36  ;;  %v1369_v39 = vpop.f32.mrb[27].mxu1 }

</bundles_post_ra>
